<compile_context>
chip_gen: v6e
topology: v6e:2x2x1
jax: 0.10.0
libtpu: 0.0.40
codegen_flags: <defaults>
</compile_context>

<pallas_src>
import jax
import jax.numpy as jnp
from jax.experimental import pallas as pl
from jax.experimental.pallas import tpu as pltpu

_LANES = 128


def _round_up(x, m):
    return ((x + m - 1) // m) * m


def critic_kernel(state_ref, action_ref, w1s_ref, w1a_ref, b1_ref,
                  w2_ref, b2_ref, w3_ref, b3_ref, q_ref):
    # state: [TB, S]    action: [TB, A]
    # w1s:   [S, Hp]    w1a:    [A, Hp]   b1: [1, Hp] (f32)
    # w2:    [Hp, Hp]   b2:     [1, Hp]   (f32)
    # w3:    [1, Hp]    b3:     [1, 1]    (SMEM scalar, f32)
    w_dt = w1s_ref.dtype  # f32 or bf16; MXU accumulates in f32 either way.

    # fc1 on the "virtual concat" -> no concatenate anywhere.
    h1 = (jnp.dot(state_ref[...].astype(w_dt), w1s_ref[...],
                  preferred_element_type=jnp.float32)
          + jnp.dot(action_ref[...].astype(w_dt), w1a_ref[...],
                    preferred_element_type=jnp.float32)
          + b1_ref[...])
    h1 = jnp.maximum(h1, 0.0)                                   # f32 VPU

    h2 = jnp.dot(h1.astype(w_dt), w2_ref[...],
                 preferred_element_type=jnp.float32) + b2_ref[...]
    h2 = jnp.maximum(h2, 0.0)                                   # f32 VPU

    # fc3 (H -> 1): f32 VPU multiply + XLU lane reduce (MXU slot stays free).
    q = jnp.sum(h2 * w3_ref[...].astype(jnp.float32), axis=-1, keepdims=True)
    q_ref[...] = (q + b3_ref[0, 0]).astype(q_ref.dtype)


def _choose_batch_tile(batch):
    # >=128 rows so the MXU isn't starved and per-step pipeline overhead is
    # amortized; keep 128 for mid-size batches so the "parallel" grid has >=2
    # steps (both v7x TensorCores busy), 256 for large batches (256-row MXU on
    # v6e/v7x).
    if batch <= 512:
        return 128
    return 256


def _vmem_limit_bytes(tb, s, a, hp, w_itemsize):
    act_in = 2 * tb * (s + a) * 4                         # state/action, double-buffered
    out = 2 * tb * 4                                      # q tile, double-buffered
    weights = 2 * ((s + a) * hp + hp * hp + hp) * w_itemsize   # conservatively 2 buffers
    biases = 2 * (2 * hp + 1) * 4
    interm = 4 * tb * hp * 4                              # h1/h2/temporaries (f32)
    est = act_in + out + weights + biases + interm
    # Generous headroom, capped at the v7x per-core physical VMEM (64 MiB).
    return int(min(64 * 2 ** 20, max(8 * 2 ** 20, 2 * est)))


def critic_forward(state, action, params, *, batch_tile=None):
    """state: [B, state_dim], action: [B, action_dim] -> q: [B, 1] (f32).

    `params` must come from pad_params_for_tpu (hidden padded to a multiple of
    128; weights optionally bf16, biases f32)."""
    w1s, w1a, b1, w2, b2, w3_row, b3 = params
    B, S = state.shape
    A = action.shape[1]
    Hp = w2.shape[0]
    assert Hp % _LANES == 0, "hidden dim must be padded (use pad_params_for_tpu)"

    TB = batch_tile or _choose_batch_tile(B)
    B_pad = _round_up(B, TB)
    if B_pad != B:
        # Zero pad rows: padded rows produce harmless values that are sliced off.
        state = jnp.pad(state, ((0, B_pad - B), (0, 0)))
        action = jnp.pad(action, ((0, B_pad - B), (0, 0)))
    grid = (B_pad // TB,)

    fixed = lambda i: (0, 0)   # weights/biases resident across batch tiles
    tiled = lambda i: (i, 0)   # batch-tiled activations / output

    w_itemsize = jnp.dtype(w1s.dtype).itemsize
    flops = 2 * B_pad * ((S + A) * Hp + Hp * Hp + Hp)
    bytes_accessed = (B_pad * (S + A + 1) * 4                       # activations in/out
                      + ((S + A) * Hp + Hp * Hp + Hp) * w_itemsize  # weights, once
                      + (2 * Hp + 1) * 4)                           # biases, once

    q_pad = pl.pallas_call(
        critic_kernel,
        out_shape=jax.ShapeDtypeStruct((B_pad, 1), jnp.float32),
        grid=grid,
        in_specs=[
            pl.BlockSpec((TB, S), tiled),                        # state
            pl.BlockSpec((TB, A), tiled),                        # action
            pl.BlockSpec((S, Hp), fixed),                        # w1 (state rows)
            pl.BlockSpec((A, Hp), fixed),                        # w1 (action rows)
            pl.BlockSpec((1, Hp), fixed),                        # b1 (f32)
            pl.BlockSpec((Hp, Hp), fixed),                       # w2
            pl.BlockSpec((1, Hp), fixed),                        # b2 (f32)
            pl.BlockSpec((1, Hp), fixed),                        # w3 as a row
            pl.BlockSpec(memory_space=pltpu.MemorySpace.SMEM),   # b3 scalar
        ],
        out_specs=pl.BlockSpec((TB, 1), tiled),
        compiler_params=pltpu.CompilerParams(
            dimension_semantics=("parallel",),                   # 2 TCs on v7x
            vmem_limit_bytes=_vmem_limit_bytes(TB, S, A, Hp, w_itemsize)),
        cost_estimate=pl.CostEstimate(
            flops=flops, transcendentals=0, bytes_accessed=bytes_accessed),
    )(state, action, w1s, w1a, b1, w2, b2, w3_row, b3)

    return q_pad[:B]


def xavier_uniform(key, fan_in, fan_out, dtype=jnp.float32):
    # matches nn.init.xavier_uniform_ for nn.Linear(fan_in, fan_out);
    # stored transposed [fan_in, fan_out] so the kernel does x @ W.
    bound = (6.0 / (fan_in + fan_out)) ** 0.5
    return jax.random.uniform(key, (fan_in, fan_out), dtype, -bound, bound)


def init_critic_params(key, state_dim, action_dim, hidden_dim):
    """Logical (unpadded, f32) parameters matching the PyTorch module."""
    k1, k2, k3 = jax.random.split(key, 3)
    in_dim = state_dim + action_dim
    w1 = xavier_uniform(k1, in_dim, hidden_dim)           # [S+A, H]
    w1s, w1a = w1[:state_dim], w1[state_dim:]             # pre-split: no runtime concat
    b1 = jnp.full((1, hidden_dim), 0.01, jnp.float32)     # init_weights: bias = 0.01
    w2 = xavier_uniform(k2, hidden_dim, hidden_dim)
    b2 = jnp.full((1, hidden_dim), 0.01, jnp.float32)
    w3_row = xavier_uniform(k3, hidden_dim, 1).T          # stored as [1, H] for VPU reduce
    b3 = jnp.full((1, 1), 0.01, jnp.float32)
    return (w1s, w1a, b1, w2, b2, w3_row, b3)


def pad_params_for_tpu(params, weight_dtype=jnp.float32):
    """Zero-pad hidden dim to a multiple of 128 and cast matmul weights to
    `weight_dtype` (biases stay f32).  Zero padding keeps the forward exact:
    padded w2 columns and w3 entries are 0, so padded lanes never reach q."""
    w1s, w1a, b1, w2, b2, w3_row, b3 = params
    H = w2.shape[0]
    ph = _round_up(H, _LANES) - H
    w1s_p = jnp.pad(w1s, ((0, 0), (0, ph))).astype(weight_dtype)
    w1a_p = jnp.pad(w1a, ((0, 0), (0, ph))).astype(weight_dtype)
    b1_p = jnp.pad(b1, ((0, 0), (0, ph)))
    w2_p = jnp.pad(w2, ((0, ph), (0, ph))).astype(weight_dtype)
    b2_p = jnp.pad(b2, ((0, 0), (0, ph)))
    w3_p = jnp.pad(w3_row, ((0, 0), (0, ph))).astype(weight_dtype)
    return (w1s_p, w1a_p, b1_p, w2_p, b2_p, w3_p, b3)


if __name__ == "__main__":
    state_dim, action_dim, hidden_dim = 16, 8, 32
    batch = 8

    key = jax.random.PRNGKey(0)
    kp, ks, ka = jax.random.split(key, 3)
    params = init_critic_params(kp, state_dim, action_dim, hidden_dim)
    state = jax.random.normal(ks, (batch, state_dim), jnp.float32)
    action = jax.random.normal(ka, (batch, action_dim), jnp.float32)

    # Plain-JAX reference in the original (unpadded, fused-W1) layout.
    w1s, w1a, b1, w2, b2, w3_row, b3 = params
    w1 = jnp.concatenate([w1s, w1a], axis=0)
    sa = jnp.concatenate([state, action], axis=1)
    ref = jnp.maximum(sa @ w1 + b1, 0.0)
    ref = jnp.maximum(ref @ w2 + b2, 0.0)
    ref = ref @ w3_row.T + b3

    # f32 weights: tight check.
    q = critic_forward(state, action, pad_params_for_tpu(params, jnp.float32))
    jax.block_until_ready(q)
    assert q.shape == (batch, 1)
    assert jnp.allclose(q, ref, atol=1e-5, rtol=1e-5)

    # bf16 weights (production path for the v6e/v7x MXU): loose check,
    # f32 biases/activations/accumulation keep the error to bf16 rounding only.
    q_bf16 = critic_forward(state, action, pad_params_for_tpu(params, jnp.bfloat16))
    jax.block_until_ready(q_bf16)
    assert q_bf16.shape == (batch, 1)
    assert jnp.allclose(q_bf16, ref, atol=5e-2, rtol=5e-2)

    print("KERNEL_OK")
</pallas_src>

<mosaic_0001>
module attributes {stable_mosaic.version = 11 : i64} {
  func.func @critic_kernel(%arg0: i32, %arg1: memref<128x16xf32, #tpu.memory_space<vmem>>, %arg2: memref<128x8xf32, #tpu.memory_space<vmem>>, %arg3: memref<16x128xf32, #tpu.memory_space<vmem>>, %arg4: memref<8x128xf32, #tpu.memory_space<vmem>>, %arg5: memref<1x128xf32, #tpu.memory_space<vmem>>, %arg6: memref<128x128xf32, #tpu.memory_space<vmem>>, %arg7: memref<1x128xf32, #tpu.memory_space<vmem>>, %arg8: memref<1x128xf32, #tpu.memory_space<vmem>>, %arg9: memref<1x1xf32, #tpu.memory_space<smem>>, %arg10: memref<128x1xf32, #tpu.memory_space<vmem>>) attributes {dimension_semantics = [#tpu.dimension_semantics<parallel>], iteration_bounds = array<i64: 1>, scalar_prefetch = 0 : i64, scratch_operands = 0 : i64, tpu.core_type = #tpu.core_type<tc>, window_params = [{transform_indices = @transform_0, window_bounds = array<i64: 128, 16>}, {transform_indices = @transform_1, window_bounds = array<i64: 128, 8>}, {pipeline_mode = #tpu.pipeline_mode<synchronous>, transform_indices = @transform_2, window_bounds = array<i64: 16, 128>}, {pipeline_mode = #tpu.pipeline_mode<synchronous>, transform_indices = @transform_3, window_bounds = array<i64: 8, 128>}, {pipeline_mode = #tpu.pipeline_mode<synchronous>, transform_indices = @transform_4, window_bounds = array<i64: 1, 128>}, {pipeline_mode = #tpu.pipeline_mode<synchronous>, transform_indices = @transform_5, window_bounds = array<i64: 128, 128>}, {pipeline_mode = #tpu.pipeline_mode<synchronous>, transform_indices = @transform_6, window_bounds = array<i64: 1, 128>}, {pipeline_mode = #tpu.pipeline_mode<synchronous>, transform_indices = @transform_7, window_bounds = array<i64: 1, 128>}, {transform_indices = @transform_8, window_bounds = array<i64: 1, 1>}, {transform_indices = @transform_9, window_bounds = array<i64: 128, 1>}]} {
    %c0 = arith.constant 0 : index
    %c0_0 = arith.constant 0 : index
    %0 = vector.load %arg1[%c0, %c0_0] : memref<128x16xf32, #tpu.memory_space<vmem>>, vector<128x16xf32>
    %c0_1 = arith.constant 0 : index
    %c0_2 = arith.constant 0 : index
    %1 = vector.load %arg3[%c0_1, %c0_2] : memref<16x128xf32, #tpu.memory_space<vmem>>, vector<16x128xf32>
    %cst = arith.constant dense<0.000000e+00> : vector<128x128xf32>
    %2 = tpu.matmul %0, %1, %cst {dimension_numbers = #tpu.dot_dimension_numbers<[1], [0], [0], [1], [0, 0, 1, 1], [], []>} : vector<128x16xf32>, vector<16x128xf32>, vector<128x128xf32> -> vector<128x128xf32>
    %c0_3 = arith.constant 0 : index
    %c0_4 = arith.constant 0 : index
    %3 = vector.load %arg2[%c0_3, %c0_4] : memref<128x8xf32, #tpu.memory_space<vmem>>, vector<128x8xf32>
    %c0_5 = arith.constant 0 : index
    %c0_6 = arith.constant 0 : index
    %4 = vector.load %arg4[%c0_5, %c0_6] : memref<8x128xf32, #tpu.memory_space<vmem>>, vector<8x128xf32>
    %cst_7 = arith.constant dense<0.000000e+00> : vector<128x128xf32>
    %5 = tpu.matmul %3, %4, %cst_7 {dimension_numbers = #tpu.dot_dimension_numbers<[1], [0], [0], [1], [0, 0, 1, 1], [], []>} : vector<128x8xf32>, vector<8x128xf32>, vector<128x128xf32> -> vector<128x128xf32>
    %6 = arith.addf %2, %5 : vector<128x128xf32>
    %c0_8 = arith.constant 0 : index
    %c0_9 = arith.constant 0 : index
    %7 = vector.load %arg5[%c0_8, %c0_9] : memref<1x128xf32, #tpu.memory_space<vmem>>, vector<1x128xf32>
    %8 = vector.broadcast %7 : vector<1x128xf32> to vector<128x128xf32>
    %9 = arith.addf %6, %8 : vector<128x128xf32>
    %cst_10 = arith.constant 0.000000e+00 : f32
    %10 = vector.broadcast %cst_10 : f32 to vector<128x128xf32>
    %11 = arith.maximumf %9, %10 : vector<128x128xf32>
    %c0_11 = arith.constant 0 : index
    %c0_12 = arith.constant 0 : index
    %12 = vector.load %arg6[%c0_11, %c0_12] : memref<128x128xf32, #tpu.memory_space<vmem>>, vector<128x128xf32>
    %cst_13 = arith.constant dense<0.000000e+00> : vector<128x128xf32>
    %13 = tpu.matmul %11, %12, %cst_13 {dimension_numbers = #tpu.dot_dimension_numbers<[1], [0], [0], [1], [0, 0, 1, 1], [], []>} : vector<128x128xf32>, vector<128x128xf32>, vector<128x128xf32> -> vector<128x128xf32>
    %c0_14 = arith.constant 0 : index
    %c0_15 = arith.constant 0 : index
    %14 = vector.load %arg7[%c0_14, %c0_15] : memref<1x128xf32, #tpu.memory_space<vmem>>, vector<1x128xf32>
    %15 = vector.broadcast %14 : vector<1x128xf32> to vector<128x128xf32>
    %16 = arith.addf %13, %15 : vector<128x128xf32>
    %cst_16 = arith.constant 0.000000e+00 : f32
    %17 = vector.broadcast %cst_16 : f32 to vector<128x128xf32>
    %18 = arith.maximumf %16, %17 : vector<128x128xf32>
    %c0_17 = arith.constant 0 : index
    %c0_18 = arith.constant 0 : index
    %19 = vector.load %arg8[%c0_17, %c0_18] : memref<1x128xf32, #tpu.memory_space<vmem>>, vector<1x128xf32>
    %20 = vector.broadcast %19 : vector<1x128xf32> to vector<128x128xf32>
    %21 = arith.mulf %18, %20 : vector<128x128xf32>
    %cst_19 = arith.constant dense<0.000000e+00> : vector<128xf32>
    %22 = vector.multi_reduction <add>, %21, %cst_19 [1] : vector<128x128xf32> to vector<128xf32>
    %23 = vector.shape_cast %22 : vector<128xf32> to vector<128x1xf32>
    %c0_20 = arith.constant 0 : index
    %c0_21 = arith.constant 0 : index
    %24 = memref.load %arg9[%c0_20, %c0_21] : memref<1x1xf32, #tpu.memory_space<smem>>
    %25 = vector.broadcast %24 : f32 to vector<128x1xf32>
    %26 = arith.addf %23, %25 : vector<128x1xf32>
    %c0_22 = arith.constant 0 : index
    %c0_23 = arith.constant 0 : index
    %27 = vector.load %arg10[%c0_22, %c0_23] : memref<128x1xf32, #tpu.memory_space<vmem>>, vector<128x1xf32>
    tpu.vector_store %arg10[%c0_22, %c0_23], %26 {strides = array<i32>} : memref<128x1xf32, #tpu.memory_space<vmem>>, vector<128x1xf32>,
    return
  }
  func.func @transform_0(%arg0: i32) -> (i32, i32) {
    %c0_i32 = arith.constant 0 : i32
    %c0_i32_0 = arith.constant 0 : i32
    return %arg0, %c0_i32 : i32, i32
  }
  func.func @transform_1(%arg0: i32) -> (i32, i32) {
    %c0_i32 = arith.constant 0 : i32
    %c0_i32_0 = arith.constant 0 : i32
    return %arg0, %c0_i32 : i32, i32
  }
  func.func @transform_2(%arg0: i32) -> (i32, i32) {
    %c0_i32 = arith.constant 0 : i32
    %c0_i32_0 = arith.constant 0 : i32
    %c0_i32_1 = arith.constant 0 : i32
    return %c0_i32, %c0_i32_0 : i32, i32
  }
  func.func @transform_3(%arg0: i32) -> (i32, i32) {
    %c0_i32 = arith.constant 0 : i32
    %c0_i32_0 = arith.constant 0 : i32
    %c0_i32_1 = arith.constant 0 : i32
    return %c0_i32, %c0_i32_0 : i32, i32
  }
  func.func @transform_4(%arg0: i32) -> (i32, i32) {
    %c0_i32 = arith.constant 0 : i32
    %c0_i32_0 = arith.constant 0 : i32
    %c0_i32_1 = arith.constant 0 : i32
    return %c0_i32, %c0_i32_0 : i32, i32
  }
  func.func @transform_5(%arg0: i32) -> (i32, i32) {
    %c0_i32 = arith.constant 0 : i32
    %c0_i32_0 = arith.constant 0 : i32
    %c0_i32_1 = arith.constant 0 : i32
    return %c0_i32, %c0_i32_0 : i32, i32
  }
  func.func @transform_6(%arg0: i32) -> (i32, i32) {
    %c0_i32 = arith.constant 0 : i32
    %c0_i32_0 = arith.constant 0 : i32
    %c0_i32_1 = arith.constant 0 : i32
    return %c0_i32, %c0_i32_0 : i32, i32
  }
  func.func @transform_7(%arg0: i32) -> (i32, i32) {
    %c0_i32 = arith.constant 0 : i32
    %c0_i32_0 = arith.constant 0 : i32
    %c0_i32_1 = arith.constant 0 : i32
    return %c0_i32, %c0_i32_0 : i32, i32
  }
  func.func @transform_8(%arg0: i32) -> (i32, i32) {
    %c0_i32 = arith.constant 0 : i32
    %c0_i32_0 = arith.constant 0 : i32
    %c0_i32_1 = arith.constant 0 : i32
    return %c0_i32, %c0_i32_0 : i32, i32
  }
  func.func @transform_9(%arg0: i32) -> (i32, i32) {
    %c0_i32 = arith.constant 0 : i32
    %c0_i32_0 = arith.constant 0 : i32
    return %arg0, %c0_i32 : i32, i32
  }
}

</mosaic_0001>

<bundles_post_ra>
// kernel: tpu_custom_call.1
= control target key start
LH: loop header
LB: loop body
LE: loop exit
PB: predicated region body
PF: predicated region fallthrough
CT: control target
= control target key end

     0   :  { %vm68_vm0 = vcmask 64512   ;;  %vm262_vm1 = vcmask 130048   ;;  %vm752_vm2 = vcmask 7168   ;;  %s1382_s3 = inlined_call_operand.vmem [shape: f32[8,128], index: 3, kind: input, shape index: {}]   ;;  %s1383_s2 = inlined_call_operand.vmem [shape: f32[16,128], index: 2, kind: input, shape index: {}]   ;;  %s1384_s1 = inlined_call_operand.vmem [shape: f32[128,8], index: 1, kind: input, shape index: {}]   ;;  %s1385_s0 = inlined_call_operand.vmem [shape: f32[128,16], index: 0, kind: input, shape index: {}]   ;;  %s1386_s5 = inlined_call_operand.vmem [shape: f32[128,128], index: 5, kind: input, shape index: {}]   ;;  %s1387_s4 = inlined_call_operand.vmem [shape: f32[1,128], index: 4, kind: input, shape index: {}]   ;;  %s1388_s6 = inlined_call_operand.vmem [shape: f32[1,128], index: 6, kind: input, shape index: {}]   ;;  %s1389_s7 = inlined_call_operand.vmem [shape: f32[1,128], index: 7, kind: input, shape index: {}]   ;;  %s1390_s8 = inlined_call_operand.<no memory space> [shape: f32[1,1], index: 8, kind: input, shape index: {}]   ;;  %s1391_s9 = inlined_call_operand.vmem [shape: f32[128,1], index: 9, kind: output, shape index: {}]  }
   0x1   :  { %v67_v0 = vld [vmem:[%s1382_s3] sm:$0xff]  ;;  %v50_v1 = vld [vmem:[%s1383_s2 + $0x8] sm:$0xff]  ;;  %v53_v6 = vld [vmem:[%s1384_s1 + $0x10] sm:$0xff] }
   0x2   :  { %v51_v2 = vld [vmem:[%s1384_s1] sm:$0xff]  ;;  %875 = vmatprep.subr.mxu0 %v67_v0  ;;  %901 = vmatprep.subr.mxu1 %v50_v1  ;;  %v52_v3 = vld [vmem:[%s1384_s1 + $0x8] sm:$0xff]  ;;  %v54_v8 = vld [vmem:[%s1384_s1 + $0x18] sm:$0xff] }
   0x3   :  { %v49_v4 = vld [vmem:[%s1383_s2] sm:$0xff]  ;;  %876 = vmatpush3.msra.mxu0 %v67_v0  ;;  %877 = vmatprep.mubr.msk.f32.mxu0 %vm68_vm0, %v51_v2  ;;  %v34_v7 = vld [vmem:[%s1385_s0 + $0x8] sm:$0xff]  ;;  %v35_v9 = vld [vmem:[%s1385_s0 + $0x10] sm:$0xff] }
   0x4   :  { %v33_v5 = vld [vmem:[%s1385_s0] sm:$0xff]  ;;  %902 = vmatpush3.msra.mxu1 %v50_v1  ;;  %878 = vmatmul.mubr.msk.f32.vlgmr.msra.gmra.mxu0 %vm68_vm0, %v52_v3  ;;  %v36_v11 = vld [vmem:[%s1385_s0 + $0x18] sm:$0xff]  ;;  %v56_v13 = vld [vmem:[%s1384_s1 + $0x28] sm:$0xff] }
   0x5   :  { %903 = vmatprep.subr.mxu1 %v49_v4  ;;  %905 = vmatprep.mubr.msk.f32.mxu1 %vm262_vm1, %v33_v5  ;;  %v55_v10 = vld [vmem:[%s1384_s1 + $0x20] sm:$0xff]  ;;  %v57_v14 = vld [vmem:[%s1384_s1 + $0x30] sm:$0xff]  ;;  %v38_v15 = vld [vmem:[%s1385_s0 + $0x28] sm:$0xff] }
   0x6   :  { %904 = vmatpush3.msra.mxu1 %v49_v4  ;;  %880 = vmatprep.mubr.msk.f32.mxu0 %vm68_vm0, %v53_v6  ;;  %v37_v12 = vld [vmem:[%s1385_s0 + $0x20] sm:$0xff]  ;;  %v510_v16 = vld [vmem:[%s1386_s5 + $0x78] sm:$0xff]  ;;  %v39_v17 = vld [vmem:[%s1385_s0 + $0x30] sm:$0xff] }
   0x7   :  { %906 = vmatmul.mubr.msk.f32.vlgmr.msra.gmra.mxu1 %vm262_vm1, %v34_v7  ;;  %v58_v18 = vld [vmem:[%s1384_s1 + $0x38] sm:$0xff]  ;;  %929 = vmatprep.subr.mxu0 %v510_v16  ;;  %v509_v19 = vld [vmem:[%s1386_s5 + $0x70] sm:$0xff]  ;;  %v59_v20 = vld [vmem:[%s1384_s1 + $0x40] sm:$0xff] }
   0x8   :  { %881 = vmatmul.mubr.msk.f32.gmra.mxu0 %vm68_vm0, %v54_v8  ;;  %908 = vmatprep.mubr.msk.f32.mxu1 %vm262_vm1, %v35_v9  ;;  %v508_v21 = vld [vmem:[%s1386_s5 + $0x68] sm:$0xff]  ;;  %v40_v22 = vld [vmem:[%s1385_s0 + $0x38] sm:$0xff]  ;;  %v41_v23 = vld [vmem:[%s1385_s0 + $0x40] sm:$0xff] }
   0x9   :  { %883 = vmatprep.mubr.msk.f32.mxu0 %vm68_vm0, %v55_v10  ;;  %930 = vmatpush3.msra.mxu0 %v510_v16  ;;  %v60_v24 = vld [vmem:[%s1384_s1 + $0x48] sm:$0xff]  ;;  %v61_v25 = vld [vmem:[%s1384_s1 + $0x50] sm:$0xff]  ;;  %v507_v26 = vld [vmem:[%s1386_s5 + $0x60] sm:$0xff] }
   0xa   :  { %985 = vmatprep.subr.mxu1 %v510_v16  ;;  %931 = vmatprep.subr.mxu0 %v509_v19  ;;  %v42_v27 = vld [vmem:[%s1385_s0 + $0x48] sm:$0xff]  ;;  %v506_v28 = vld [vmem:[%s1386_s5 + $0x58] sm:$0xff]  ;;  %v43_v29 = vld [vmem:[%s1385_s0 + $0x50] sm:$0xff] }
   0xb   :  { %909 = vmatmul.mubr.msk.f32.gmra.mxu1 %vm262_vm1, %v36_v11  ;;  %932 = vmatpush3.msra.mxu0 %v509_v19  ;;  %v62_v30 = vld [vmem:[%s1384_s1 + $0x58] sm:$0xff]  ;;  %v63_v31 = vld [vmem:[%s1384_s1 + $0x60] sm:$0xff]  ;;  %v505_v32 = vld [vmem:[%s1386_s5 + $0x50] sm:$0xff] }
   0xc   :  { %911 = vmatprep.mubr.msk.f32.mxu1 %vm262_vm1, %v37_v12  ;;  %884 = vmatmul.mubr.msk.f32.gmra.mxu0 %vm68_vm0, %v56_v13  ;;  %v44_v33 = vld [vmem:[%s1385_s0 + $0x58] sm:$0xff]  ;;  %v45_v34 = vld [vmem:[%s1385_s0 + $0x60] sm:$0xff]  ;;  %v64_v35 = vld [vmem:[%s1384_s1 + $0x68] sm:$0xff] }
   0xd   :  { %886 = vmatprep.mubr.msk.f32.mxu0 %vm68_vm0, %v57_v14  ;;  %933 = vmatprep.subr.mxu0 %v508_v21  ;;  %v65_v36 = vld [vmem:[%s1384_s1 + $0x70] sm:$0xff]  ;;  %v504_v37 = vld [vmem:[%s1386_s5 + $0x48] sm:$0xff]  ;;  %v503_v39 = vld [vmem:[%s1386_s5 + $0x40] sm:$0xff] }
   0xe   :  { %1001 = vmatpush3.msra.mxu1 %v510_v16  ;;  %934 = vmatpush3.msra.mxu0 %v508_v21  ;;  %v46_v38 = vld [vmem:[%s1385_s0 + $0x68] sm:$0xff]  ;;  %v47_v40 = vld [vmem:[%s1385_s0 + $0x70] sm:$0xff]  ;;  %v66_v41 = vld [vmem:[%s1384_s1 + $0x78] sm:$0xff] }
   0xf   :  { %912 = vmatmul.mubr.msk.f32.gmra.mxu1 %vm262_vm1, %v38_v15  ;;  %935 = vmatprep.subr.mxu0 %v507_v26  ;;  %v502_v42 = vld [vmem:[%s1386_s5 + $0x38] sm:$0xff]  ;;  %v501_v44 = vld [vmem:[%s1386_s5 + $0x30] sm:$0xff]  ;;  %v500_v45 = vld [vmem:[%s1386_s5 + $0x28] sm:$0xff] }
  0x10   :  { %914 = vmatprep.mubr.msk.f32.mxu1 %vm262_vm1, %v39_v17  ;;  %887 = vmatmul.mubr.msk.f32.gmra.mxu0 %vm68_vm0, %v58_v18  ;;  %v48_v43 = vld [vmem:[%s1385_s0 + $0x78] sm:$0xff]  ;;  %v499_v46 = vld [vmem:[%s1386_s5 + $0x20] sm:$0xff]  ;;  %v497_v48 = vld [vmem:[%s1386_s5 + $0x10] sm:$0xff] }
  0x11   :  { %889 = vmatprep.mubr.msk.f32.mxu0 %vm68_vm0, %v59_v20  ;;  %936 = vmatpush3.msra.mxu0 %v507_v26  ;;  %v498_v47 = vld [vmem:[%s1386_s5 + $0x18] sm:$0xff]  ;;  %v496_v49 = vld [vmem:[%s1386_s5 + $0x8] sm:$0xff]  ;;  %v495_v50 = vld [vmem:[%s1386_s5] sm:$0xff] }
  0x12   :  { %986 = vmatprep.subr.mxu1 %v509_v19  ;;  %937 = vmatprep.subr.mxu0 %v506_v28  ;;  %v1255_v55 = vld [vmem:[%s1387_s4] ss:$0 sm:$0xff] }
  0x13   :  { %915 = vmatmul.mubr.msk.f32.gmra.mxu1 %vm262_vm1, %v40_v22  ;;  %938 = vmatpush3.msra.mxu0 %v506_v28 }
  0x14   :  { %917 = vmatprep.mubr.msk.f32.mxu1 %vm262_vm1, %v41_v23  ;;  %890 = vmatmul.mubr.msk.f32.gmra.mxu0 %vm68_vm0, %v60_v24 }
  0x15   :  { %892 = vmatprep.mubr.msk.f32.mxu0 %vm68_vm0, %v61_v25  ;;  %939 = vmatprep.subr.mxu0 %v505_v32 }
  0x16   :  { %1002 = vmatpush3.msra.mxu1 %v509_v19  ;;  %940 = vmatpush3.msra.mxu0 %v505_v32 }
  0x17   :  { %918 = vmatmul.mubr.msk.f32.gmra.mxu1 %vm262_vm1, %v42_v27  ;;  %941 = vmatprep.subr.mxu0 %v504_v37 }
  0x18   :  { %920 = vmatprep.mubr.msk.f32.mxu1 %vm262_vm1, %v43_v29  ;;  %893 = vmatmul.mubr.msk.f32.gmra.mxu0 %vm68_vm0, %v62_v30 }
  0x19   :  { %895 = vmatprep.mubr.msk.f32.mxu0 %vm68_vm0, %v63_v31  ;;  %942 = vmatpush3.msra.mxu0 %v504_v37 }
  0x1a   :  { %987 = vmatprep.subr.mxu1 %v508_v21  ;;  %943 = vmatprep.subr.mxu0 %v503_v39 }
  0x1b   :  { %921 = vmatmul.mubr.msk.f32.gmra.mxu1 %vm262_vm1, %v44_v33  ;;  %944 = vmatpush3.msra.mxu0 %v503_v39 }
  0x1c   :  { %923 = vmatprep.mubr.msk.f32.mxu1 %vm262_vm1, %v45_v34  ;;  %896 = vmatmul.mubr.msk.f32.gmra.mxu0 %vm68_vm0, %v64_v35 }
  0x1d   :  { %898 = vmatprep.mubr.msk.f32.mxu0 %vm68_vm0, %v65_v36  ;;  %1003 = vmatpush3.msra.mxu1 %v508_v21 }
  0x1e   :  { %945 = vmatprep.subr.mxu0 %v502_v42  ;;  %988 = vmatprep.subr.mxu1 %v507_v26 }
  0x1f   :  { %924 = vmatmul.mubr.msk.f32.gmra.mxu1 %vm262_vm1, %v46_v38  ;;  %946 = vmatpush3.msra.mxu0 %v502_v42 }
  0x20   :  { %926 = vmatprep.mubr.msk.f32.mxu1 %vm262_vm1, %v47_v40  ;;  %899 = vmatmul.mubr.msk.f32.gmra.mxu0 %vm68_vm0, %v66_v41 }
  0x21   :  { %947 = vmatprep.subr.mxu0 %v501_v44  ;;  %1004 = vmatpush3.msra.mxu1 %v507_v26 }
  0x22   :  { %948 = vmatpush3.msra.mxu0 %v501_v44  ;;  %989 = vmatprep.subr.mxu1 %v506_v28 }
  0x23   :  { %927 = vmatmul.mubr.msk.f32.gmra.mxu1 %vm262_vm1, %v48_v43  ;;  %949 = vmatprep.subr.mxu0 %v500_v45 }
  0x24   :  { %1005 = vmatpush3.msra.mxu1 %v506_v28  ;;  %950 = vmatpush3.msra.mxu0 %v500_v45 }
  0x25   :  { %990 = vmatprep.subr.mxu1 %v505_v32  ;;  %951 = vmatprep.subr.mxu0 %v499_v46 }
  0x26   :  { %1006 = vmatpush3.msra.mxu1 %v505_v32  ;;  %952 = vmatpush3.msra.mxu0 %v499_v46 }
  0x27   :  { %991 = vmatprep.subr.mxu1 %v504_v37  ;;  %953 = vmatprep.subr.mxu0 %v498_v47 }
  0x28   :  { %1007 = vmatpush3.msra.mxu1 %v504_v37  ;;  %954 = vmatpush3.msra.mxu0 %v498_v47 }
  0x29   :  { %992 = vmatprep.subr.mxu1 %v503_v39  ;;  %955 = vmatprep.subr.mxu0 %v497_v48 }
  0x2a   :  { %1008 = vmatpush3.msra.mxu1 %v503_v39  ;;  %956 = vmatpush3.msra.mxu0 %v497_v48 }
  0x2b   :  { %993 = vmatprep.subr.mxu1 %v502_v42  ;;  %957 = vmatprep.subr.mxu0 %v496_v49 }
  0x2c   :  { %1009 = vmatpush3.msra.mxu1 %v502_v42  ;;  %958 = vmatpush3.msra.mxu0 %v496_v49 }
  0x2d   :  { %994 = vmatprep.subr.mxu1 %v501_v44  ;;  %959 = vmatprep.subr.mxu0 %v495_v50 }
  0x2e   :  { %1010 = vmatpush3.msra.mxu1 %v501_v44  ;;  %960 = vmatpush3.msra.mxu0 %v495_v50 }
  0x2f   :  { %995 = vmatprep.subr.mxu1 %v500_v45 }
  0x30   :  { %1011 = vmatpush3.msra.mxu1 %v500_v45 }
  0x31   :  { %996 = vmatprep.subr.mxu1 %v499_v46 }
  0x32   :  { %1012 = vmatpush3.msra.mxu1 %v499_v46 }
  0x33   :  { %997 = vmatprep.subr.mxu1 %v498_v47 }
  0x34   :  { %1013 = vmatpush3.msra.mxu1 %v498_v47 }
  0x35   :  { %998 = vmatprep.subr.mxu1 %v497_v48 }
  0x36   :  { %1014 = vmatpush3.msra.mxu1 %v497_v48 }
  0x37   :  { %999 = vmatprep.subr.mxu1 %v496_v49 }
  0x38   :  { %1015 = vmatpush3.msra.mxu1 %v496_v49 }
  0x39   :  { %1000 = vmatprep.subr.mxu1 %v495_v50 }
  0x3a   :  { %1016 = vmatpush3.msra.mxu1 %v495_v50 }
  0xc4   :  { %v879_v51 = vpop.f32.mrf.mxu0 }
  0xc6   :  { %v183_v52 = vpop.f32.mrf.mxu0 }
  0xc7   :  { %v907_v53 = vpop.f32.mrf.mxu1 }
  0xc8   :  { %v383_v54 = vadd.f32 %v907_v53, %v879_v51  ;;  %v882_v56 = vpop.f32.mrf.mxu0 }
  0xc9   :  { %v377_v57 = vpop.f32.mrf.mxu1 }
  0xca   :  { %v378_v58 = vadd.f32 %v377_v57, %v183_v52  ;;  %v193_v59 = vpop.f32.mrf.mxu0  ;;  %v464_v60 = vadd.f32 %v1255_v55, %v383_v54 }
  0xcb   :  { %v910_v61 = vpop.f32.mrf.mxu1 }
  0xcc   :  { %v463_v62 = vadd.f32 %v1255_v55, %v378_v58  ;;  %v393_v63 = vadd.f32 %v910_v61, %v882_v56  ;;  %v885_v0 = vpop.f32.mrf.mxu0  ;;  %v480_v5 = vmax.f32 %v464_v60, 0.0 }
  0xcd   :  { %v387_v1 = vpop.f32.mrf.mxu1 }
  0xce   :  { %v479_v2 = vmax.f32 %v463_v62, 0.0  ;;  %v388_v3 = vadd.f32 %v387_v1, %v193_v59  ;;  %v203_v4 = vpop.f32.mrf.mxu0  ;;  %v466_v6 = vadd.f32 %v1255_v55, %v393_v63 }
  0xcf   :  { %v913_v7 = vpop.f32.mrf.mxu1 }
  0xd0   :  { %v465_v8 = vadd.f32 %v1255_v55, %v388_v3  ;;  %v403_v9 = vadd.f32 %v913_v7, %v885_v0  ;;  %961 = vmatprep.mubr.f32.mxu0 %v479_v2  ;;  %v888_v10 = vpop.f32.mrf.mxu0  ;;  %v482_v16 = vmax.f32 %v466_v6, 0.0 }
  0xd1   :  { %v397_v11 = vpop.f32.mrf.mxu1  ;;  %962 = vmatmul.mubr.f32.vlgmr.msra.gmra.mxu0 %v480_v5  ;;  %v1276_v5 = vld [vmem:[%s1388_s6] ss:$0 sm:$0xff] }
  0xd2   :  { %v481_v12 = vmax.f32 %v465_v8, 0.0  ;;  %v468_v13 = vadd.f32 %v1255_v55, %v403_v9  ;;  %v398_v14 = vadd.f32 %v397_v11, %v203_v4  ;;  %v213_v15 = vpop.f32.mrf.mxu0  ;;  %v1282_v9 = vld [vmem:[%s1389_s7] ss:$0 sm:$0xff] }
  0xd3   :  { %v916_v17 = vpop.f32.mrf.mxu1 }
  0xd4   :  { %v467_v18 = vadd.f32 %v1255_v55, %v398_v14  ;;  %v413_v19 = vadd.f32 %v916_v17, %v888_v10  ;;  %964 = vmatprep.mubr.f32.mxu0 %v481_v12  ;;  %v891_v20 = vpop.f32.mrf.mxu0  ;;  %v484_v21 = vmax.f32 %v468_v13, 0.0 }
  0xd5   :  { %v407_v22 = vpop.f32.mrf.mxu1  ;;  %965 = vmatmul.mubr.f32.gmra.mxu0 %v482_v16 }
  0xd6   :  { %v483_v23 = vmax.f32 %v467_v18, 0.0  ;;  %v470_v24 = vadd.f32 %v1255_v55, %v413_v19  ;;  %v408_v25 = vadd.f32 %v407_v22, %v213_v15  ;;  %v223_v26 = vpop.f32.mrf.mxu0 }
  0xd7   :  { %v919_v27 = vpop.f32.mrf.mxu1 }
  0xd8   :  { %v469_v28 = vadd.f32 %v1255_v55, %v408_v25  ;;  %v423_v29 = vadd.f32 %v919_v27, %v891_v20  ;;  %967 = vmatprep.mubr.f32.mxu0 %v483_v23  ;;  %v894_v30 = vpop.f32.mrf.mxu0  ;;  %v486_v31 = vmax.f32 %v470_v24, 0.0 }
  0xd9   :  { %v417_v32 = vpop.f32.mrf.mxu1  ;;  %968 = vmatmul.mubr.f32.gmra.mxu0 %v484_v21 }
  0xda   :  { %v485_v33 = vmax.f32 %v469_v28, 0.0  ;;  %v472_v34 = vadd.f32 %v1255_v55, %v423_v29  ;;  %v418_v35 = vadd.f32 %v417_v32, %v223_v26  ;;  %v233_v36 = vpop.f32.mrf.mxu0 }
  0xdb   :  { %v922_v37 = vpop.f32.mrf.mxu1 }
  0xdc   :  { %v471_v38 = vadd.f32 %v1255_v55, %v418_v35  ;;  %v433_v39 = vadd.f32 %v922_v37, %v894_v30  ;;  %970 = vmatprep.mubr.f32.mxu0 %v485_v33  ;;  %v897_v40 = vpop.f32.mrf.mxu0  ;;  %v488_v41 = vmax.f32 %v472_v34, 0.0 }
  0xdd   :  { %v427_v42 = vpop.f32.mrf.mxu1  ;;  %971 = vmatmul.mubr.f32.gmra.mxu0 %v486_v31 }
  0xde   :  { %v487_v43 = vmax.f32 %v471_v38, 0.0  ;;  %v474_v44 = vadd.f32 %v1255_v55, %v433_v39  ;;  %v428_v45 = vadd.f32 %v427_v42, %v233_v36  ;;  %v243_v46 = vpop.f32.mrf.mxu0 }
  0xdf   :  { %v925_v47 = vpop.f32.mrf.mxu1 }
  0xe0   :  { %v473_v48 = vadd.f32 %v1255_v55, %v428_v45  ;;  %v443_v49 = vadd.f32 %v925_v47, %v897_v40  ;;  %973 = vmatprep.mubr.f32.mxu0 %v487_v43  ;;  %v900_v50 = vpop.f32.mrf.mxu0  ;;  %v490_v51 = vmax.f32 %v474_v44, 0.0 }
  0xe1   :  { %v437_v52 = vpop.f32.mrf.mxu1  ;;  %974 = vmatmul.mubr.f32.gmra.mxu0 %v488_v41 }
  0xe2   :  { %v489_v53 = vmax.f32 %v473_v48, 0.0  ;;  %v476_v54 = vadd.f32 %v1255_v55, %v443_v49  ;;  %v438_v56 = vadd.f32 %v437_v52, %v243_v46  ;;  %v253_v58 = vpop.f32.mrf.mxu0 }
  0xe3   :  { %v928_v57 = vpop.f32.mrf.mxu1 }
  0xe4   :  { %v475_v59 = vadd.f32 %v1255_v55, %v438_v56  ;;  %v453_v60 = vadd.f32 %v928_v57, %v900_v50  ;;  %976 = vmatprep.mubr.f32.mxu1 %v489_v53  ;;  %v492_v61 = vmax.f32 %v476_v54, 0.0 }
  0xe5   :  { %v447_v62 = vpop.f32.mrf.mxu1  ;;  %977 = vmatmul.mubr.f32.vlgmr.msra.gmra.mxu1 %v490_v51 }
  0xe6   :  { %v491_v63 = vmax.f32 %v475_v59, 0.0  ;;  %v478_v0 = vadd.f32 %v1255_v55, %v453_v60  ;;  %v448_v1 = vadd.f32 %v447_v62, %v253_v58 }
  0xe8   :  { %v477_v2 = vadd.f32 %v1255_v55, %v448_v1  ;;  %979 = vmatprep.mubr.f32.mxu1 %v491_v63  ;;  %v494_v3 = vmax.f32 %v478_v0, 0.0 }
  0xe9   :  { %980 = vmatmul.mubr.f32.gmra.mxu1 %v492_v61 }
  0xea   :  { %v493_v4 = vmax.f32 %v477_v2, 0.0 }
  0xec   :  { %982 = vmatprep.mubr.f32.mxu1 %v493_v4 }
  0xed   :  { %983 = vmatmul.mubr.f32.gmra.mxu1 %v494_v3 }
 0x191   :  { %v963_v6 = vpop.f32.mrf.mxu0 }
 0x192   :  { %v590_v7 = vadd.f32 %v963_v6, %v1276_v5 }
 0x193   :  { %v584_v8 = vpop.f32.mrf.mxu0 }
 0x194   :  { %v664_v55 = vmax.f32 %v590_v7, 0.0  ;;  %v585_v10 = vadd.f32 %v1276_v5, %v584_v8  ;;  %v735_v8 = vstv %s1390_s8 }
 0x195   :  { %v966_v11 = vpop.f32.mrf.mxu0 }
 0x196   :  { %v663_v12 = vmax.f32 %v585_v10, 0.0  ;;  %v600_v13 = vadd.f32 %v966_v11, %v1276_v5  ;;  %v687_v14 = vmul.f32 %v1282_v9, %v664_v55 }
 0x197   :  { %v594_v15 = vpop.f32.mrf.mxu0 }
 0x198   :  { %v666_v16 = vmax.f32 %v600_v13, 0.0  ;;  %v595_v17 = vadd.f32 %v1276_v5, %v594_v15  ;;  %704 = vadd.xlane.f32.xlu0 %v687_v14  ;;  %v686_v22 = vmul.f32 %v1282_v9, %v663_v12 }
 0x199   :  { %v969_v18 = vpop.f32.mrf.mxu0 }
 0x19a   :  { %v665_v19 = vmax.f32 %v595_v17, 0.0  ;;  %v610_v20 = vadd.f32 %v969_v18, %v1276_v5  ;;  %v689_v21 = vmul.f32 %v1282_v9, %v666_v16 }
 0x19b   :  { %v604_v23 = vpop.f32.mrf.mxu0 }
 0x19c   :  { %v605_v24 = vadd.f32 %v1276_v5, %v604_v23  ;;  %708 = vadd.xlane.f32.xlu1 %v689_v21  ;;  %702 = vadd.xlane.f32.xlu0 %v686_v22  ;;  %v668_v26 = vmax.f32 %v610_v20, 0.0  ;;  %v688_v29 = vmul.f32 %v1282_v9, %v665_v19 }
 0x19d   :  { %v972_v25 = vpop.f32.mrf.mxu0 }
 0x19e   :  { %v667_v27 = vmax.f32 %v605_v24, 0.0  ;;  %v620_v28 = vadd.f32 %v972_v25, %v1276_v5  ;;  %v691_v37 = vmul.f32 %v1282_v9, %v668_v26 }
 0x19f   :  { %v614_v30 = vpop.f32.mrf.mxu0 }
 0x1a0   :  { %v615_v31 = vadd.f32 %v1276_v5, %v614_v30  ;;  %706 = vadd.xlane.f32.xlu1 %v688_v29  ;;  %v690_v32 = vmul.f32 %v1282_v9, %v667_v27  ;;  %v670_v34 = vmax.f32 %v620_v28, 0.0 }
 0x1a1   :  { %v975_v33 = vpop.f32.mrf.mxu0 }
 0x1a2   :  { %v669_v35 = vmax.f32 %v615_v31, 0.0  ;;  %v630_v36 = vadd.f32 %v975_v33, %v1276_v5  ;;  %710 = vadd.xlane.f32.xlu0 %v690_v32  ;;  %v693_v45 = vmul.f32 %v1282_v9, %v670_v34 }
 0x1a3   :  { %v624_v38 = vpop.f32.mrf.mxu0 }
 0x1a4   :  { %v625_v39 = vadd.f32 %v1276_v5, %v624_v38  ;;  %712 = vadd.xlane.f32.xlu1 %v691_v37  ;;  %v692_v40 = vmul.f32 %v1282_v9, %v669_v35  ;;  %v672_v42 = vmax.f32 %v630_v36, 0.0 }
 0x1a5   :  { %v978_v41 = vpop.f32.mrf.mxu1 }
 0x1a6   :  { %v671_v43 = vmax.f32 %v625_v39, 0.0  ;;  %v640_v44 = vadd.f32 %v978_v41, %v1276_v5  ;;  %714 = vadd.xlane.f32.xlu0 %v692_v40  ;;  %v695_v53 = vmul.f32 %v1282_v9, %v672_v42 }
 0x1a7   :  { %v634_v46 = vpop.f32.mrf.mxu1 }
 0x1a8   :  { %v635_v47 = vadd.f32 %v1276_v5, %v634_v46  ;;  %716 = vadd.xlane.f32.xlu1 %v693_v45  ;;  %v694_v48 = vmul.f32 %v1282_v9, %v671_v43  ;;  %v674_v50 = vmax.f32 %v640_v44, 0.0 }
 0x1a9   :  { %v981_v49 = vpop.f32.mrf.mxu1 }
 0x1aa   :  { %v673_v51 = vmax.f32 %v635_v47, 0.0  ;;  %v650_v52 = vadd.f32 %v981_v49, %v1276_v5  ;;  %718 = vadd.xlane.f32.xlu0 %v694_v48  ;;  %v697_v62 = vmul.f32 %v1282_v9, %v674_v50 }
 0x1ab   :  { %v644_v54 = vpop.f32.mrf.mxu1 }
 0x1ac   :  { %v645_v56 = vadd.f32 %v1276_v5, %v644_v54  ;;  %720 = vadd.xlane.f32.xlu1 %v695_v53  ;;  %v696_v57 = vmul.f32 %v1282_v9, %v673_v51  ;;  %v676_v59 = vmax.f32 %v650_v52, 0.0 }
 0x1ad   :  { %v984_v58 = vpop.f32.mrf.mxu1 }
 0x1ae   :  { %v675_v60 = vmax.f32 %v645_v56, 0.0  ;;  %v660_v61 = vadd.f32 %v984_v58, %v1276_v5  ;;  %722 = vadd.xlane.f32.xlu0 %v696_v57  ;;  %v699_v4 = vmul.f32 %v1282_v9, %v676_v59 }
 0x1af   :  { %v654_v63 = vpop.f32.mrf.mxu1 }
 0x1b0   :  { %v655_v0 = vadd.f32 %v1276_v5, %v654_v63  ;;  %724 = vadd.xlane.f32.xlu1 %v697_v62  ;;  %v698_v1 = vmul.f32 %v1282_v9, %v675_v60  ;;  %v678_v2 = vmax.f32 %v660_v61, 0.0 }
 0x1b2   :  { %v677_v3 = vmax.f32 %v655_v0, 0.0  ;;  %726 = vadd.xlane.f32.xlu0 %v698_v1  ;;  %v701_v7 = vmul.f32 %v1282_v9, %v678_v2 }
 0x1b4   :  { %728 = vadd.xlane.f32.xlu1 %v699_v4  ;;  %v700_v6 = vmul.f32 %v1282_v9, %v677_v3 }
 0x1b6   :  { %730 = vadd.xlane.f32.xlu0 %v700_v6 }
 0x1b8   :  { %732 = vadd.xlane.f32.xlu1 %v701_v7 }
 0x221   :  { %v705_v5 = vpop.xlane.xlu0 %704 }
 0x222   :  { %v737_v55 = vadd.f32 %v735_v8, %v705_v5 }
 0x224   :  { %754 = vst.msk [vmem:[%s1391_s9 + $0x8] sm:$0xff] %vm752_vm2, %v737_v55 }
 0x225   :  { %v709_v10 = vpop.xlane.xlu1 %708  ;;  %v703_v11 = vpop.xlane.xlu0 %702 }
 0x226   :  { %v739_v12 = vadd.f32 %v735_v8, %v709_v10  ;;  %v736_v13 = vadd.f32 %v735_v8, %v703_v11 }
 0x228   :  { %756 = vst.msk [vmem:[%s1391_s9 + $0x18] sm:$0xff] %vm752_vm2, %v739_v12  ;;  %753 = vst.msk [vmem:[%s1391_s9] sm:$0xff] %vm752_vm2, %v736_v13 }
 0x229   :  { %v707_v9 = vpop.xlane.xlu1 %706 }
 0x22a   :  { %v738_v14 = vadd.f32 %v735_v8, %v707_v9 }
 0x22b   :  { %v711_v15 = vpop.xlane.xlu0 %710 }
 0x22c   :  { %755 = vst.msk [vmem:[%s1391_s9 + $0x10] sm:$0xff] %vm752_vm2, %v738_v14  ;;  %v740_v16 = vadd.f32 %v735_v8, %v711_v15 }
 0x22d   :  { %v713_v17 = vpop.xlane.xlu1 %712 }
 0x22e   :  { %757 = vst.msk [vmem:[%s1391_s9 + $0x20] sm:$0xff] %vm752_vm2, %v740_v16  ;;  %v741_v18 = vadd.f32 %v735_v8, %v713_v17 }
 0x22f   :  { %v715_v19 = vpop.xlane.xlu0 %714 }
 0x230   :  { %758 = vst.msk [vmem:[%s1391_s9 + $0x28] sm:$0xff] %vm752_vm2, %v741_v18  ;;  %v742_v20 = vadd.f32 %v735_v8, %v715_v19 }
 0x231   :  { %v717_v21 = vpop.xlane.xlu1 %716 }
 0x232   :  { %759 = vst.msk [vmem:[%s1391_s9 + $0x30] sm:$0xff] %vm752_vm2, %v742_v20  ;;  %v743_v22 = vadd.f32 %v735_v8, %v717_v21 }
 0x233   :  { %v719_v23 = vpop.xlane.xlu0 %718 }
 0x234   :  { %760 = vst.msk [vmem:[%s1391_s9 + $0x38] sm:$0xff] %vm752_vm2, %v743_v22  ;;  %v744_v24 = vadd.f32 %v735_v8, %v719_v23 }
 0x235   :  { %v721_v25 = vpop.xlane.xlu1 %720 }
 0x236   :  { %761 = vst.msk [vmem:[%s1391_s9 + $0x40] sm:$0xff] %vm752_vm2, %v744_v24  ;;  %v745_v26 = vadd.f32 %v735_v8, %v721_v25 }
 0x237   :  { %v723_v27 = vpop.xlane.xlu0 %722 }
 0x238   :  { %762 = vst.msk [vmem:[%s1391_s9 + $0x48] sm:$0xff] %vm752_vm2, %v745_v26  ;;  %v746_v28 = vadd.f32 %v735_v8, %v723_v27 }
 0x239   :  { %v725_v29 = vpop.xlane.xlu1 %724 }
 0x23a   :  { %763 = vst.msk [vmem:[%s1391_s9 + $0x50] sm:$0xff] %vm752_vm2, %v746_v28  ;;  %v747_v30 = vadd.f32 %v735_v8, %v725_v29 }
 0x23b   :  { %v727_v31 = vpop.xlane.xlu0 %726 }
 0x23c   :  { %764 = vst.msk [vmem:[%s1391_s9 + $0x58] sm:$0xff] %vm752_vm2, %v747_v30  ;;  %v748_v32 = vadd.f32 %v735_v8, %v727_v31 }
 0x23d   :  { %v729_v33 = vpop.xlane.xlu1 %728 }
 0x23e   :  { %765 = vst.msk [vmem:[%s1391_s9 + $0x60] sm:$0xff] %vm752_vm2, %v748_v32  ;;  %v749_v34 = vadd.f32 %v735_v8, %v729_v33 }
 0x23f   :  { %v731_v35 = vpop.xlane.xlu0 %730 }
 0x240   :  { %766 = vst.msk [vmem:[%s1391_s9 + $0x68] sm:$0xff] %vm752_vm2, %v749_v34  ;;  %v750_v36 = vadd.f32 %v735_v8, %v731_v35 }
 0x241   :  { %v733_v37 = vpop.xlane.xlu1 %732 }
 0x242   :  { %767 = vst.msk [vmem:[%s1391_s9 + $0x70] sm:$0xff] %vm752_vm2, %v750_v36  ;;  %v751_v38 = vadd.f32 %v735_v8, %v733_v37 }
 0x244   :  { %768 = vst.msk [vmem:[%s1391_s9 + $0x78] sm:$0xff] %vm752_vm2, %v751_v38 }

</bundles_post_ra>
